<compile_context>
chip_gen: v7x
topology: tpu7x:2x2x1
jax: 0.10.0
libtpu: 0.0.40
codegen_flags: <defaults>
</compile_context>

<pallas_src>
import jax
import jax.numpy as jnp
from jax.experimental import pallas as pl
from jax.experimental.pallas import tpu as pltpu


STATE_DIM = 4      # CartPole-v1 observation dim
HIDDEN_DIM = 128
ACTION_DIM = 2     # CartPole-v1 action dim


def policy_net_kernel(x_ref, w_ref, b2d_ref, o_ref):
    # x_ref:  (bt, STATE_DIM)              f32, VMEM
    # w_ref:  (STATE_DIM + 2, HIDDEN_DIM)  f32, VMEM
    #         rows 0..3 = W1^T, row 4 = b1, row 5 = w2[:,0] - w2[:,1]
    # b2d_ref:(1,)                         f32, SMEM  (b2[0] - b2[1])
    # o_ref:  (bt, ACTION_DIM)             f32, VMEM
    bt = x_ref.shape[0]
    x = x_ref[...]

    # fc1 on the VPU: h starts at b1, then 4 static unrolled broadcast-FMAs.
    h = jnp.broadcast_to(w_ref[STATE_DIM:STATE_DIM + 1, :], (bt, HIDDEN_DIM))
    for k in range(STATE_DIM):                       # fully unrolled
        h = h + x[:, k:k + 1] * w_ref[k:k + 1, :]
    h = jnp.maximum(h, 0.0)                          # ReLU

    # fc2 + softmax over 2 classes == sigmoid of the logit difference (exact).
    w2_diff = w_ref[STATE_DIM + 1:STATE_DIM + 2, :]                  # (1, 128)
    d = jnp.sum(h * w2_diff, axis=-1, keepdims=True) + b2d_ref[0]    # (bt, 1)
    p0 = jax.nn.sigmoid(d)                                           # EUP
    o_ref[...] = jnp.concatenate([p0, 1.0 - p0], axis=-1).astype(o_ref.dtype)


def policy_net_forward(x, w1, b1, w2, b2, *, block_b=None):
    """x: (B, state_dim) f32. Weights stored as (in_features, out_features)
    (i.e. transpose of PyTorch's nn.Linear weight). Returns (B, action_dim)
    action probabilities."""
    B = x.shape[0]

    # Host-side (wrapper) folding — done once, outside the kernel.
    w2_diff = (w2[:, 0] - w2[:, 1]).reshape(1, HIDDEN_DIM)             # (1, 128)
    w_packed = jnp.concatenate(
        [w1, b1.reshape(1, HIDDEN_DIM), w2_diff], axis=0)              # (6, 128)
    b2_flat = b2.reshape(-1)
    b2_diff = (b2_flat[0] - b2_flat[1]).reshape(1)                     # (1,)

    if block_b is None:
        # Whole batch in one tile when small (block == full dim is always a
        # legal tiling); otherwise 1024-row tiles, well inside v7x VMEM.
        block_b = B if B <= 1024 else 1024
    assert B % block_b == 0, "batch must be divisible by the batch tile"
    grid = (B // block_b,)

    return pl.pallas_call(
        policy_net_kernel,
        out_shape=jax.ShapeDtypeStruct((B, ACTION_DIM), jnp.float32),
        grid=grid,
        in_specs=[
            # Batch-tiled activations.
            pl.BlockSpec((block_b, STATE_DIM), lambda i: (i, 0)),
            # Packed weights: constant block index -> loaded into VMEM once and
            # reused across all batch tiles (one DMA descriptor total).
            pl.BlockSpec((STATE_DIM + 2, HIDDEN_DIM), lambda i: (0, 0)),
            # Scalar bias-difference lives in SMEM.
            pl.BlockSpec((1,), lambda i: (0,),
                         memory_space=pltpu.MemorySpace.SMEM),
        ],
        out_specs=pl.BlockSpec((block_b, ACTION_DIM), lambda i: (i, 0)),
        compiler_params=pltpu.CompilerParams(
            dimension_semantics=("parallel",)),  # uses both TCs on v7x
    )(x, w_packed, b2_diff)


def policy_net_reference(x, w1, b1, w2, b2):
    """Pure-JAX reference matching the PyTorch forward pass."""
    h = jnp.maximum(x @ w1 + b1, 0.0)
    logits = h @ w2 + b2
    return jax.nn.softmax(logits, axis=-1)


def init_params(key):
    """Deterministic init mimicking PyTorch nn.Linear (uniform +-1/sqrt(fan_in))."""
    k1, k2, k3, k4 = jax.random.split(key, 4)
    bound1 = 1.0 / jnp.sqrt(jnp.float32(STATE_DIM))
    bound2 = 1.0 / jnp.sqrt(jnp.float32(HIDDEN_DIM))
    # Stored as (in_features, out_features) == transpose of PyTorch's weight.
    w1 = jax.random.uniform(k1, (STATE_DIM, HIDDEN_DIM), jnp.float32, -bound1, bound1)
    b1 = jax.random.uniform(k2, (1, HIDDEN_DIM), jnp.float32, -bound1, bound1)
    w2 = jax.random.uniform(k3, (HIDDEN_DIM, ACTION_DIM), jnp.float32, -bound2, bound2)
    b2 = jax.random.uniform(k4, (1, ACTION_DIM), jnp.float32, -bound2, bound2)
    return w1, b1, w2, b2


if __name__ == "__main__":
    key = jax.random.PRNGKey(0)
    k_params, k_x = jax.random.split(key)
    w1, b1, w2, b2 = init_params(k_params)

    B = 8  # e.g. 8 fused env steps / vectorized envs in one pallas_call
    x = jax.random.normal(k_x, (B, STATE_DIM), jnp.float32)

    probs = policy_net_forward(x, w1, b1, w2, b2)
    probs = jax.block_until_ready(probs)

    # Sanity: correct shape, rows sum to ~1, matches the dense reference.
    ref = policy_net_reference(x, w1, b1, w2, b2)
    assert probs.shape == (B, ACTION_DIM)
    assert bool(jnp.all(jnp.abs(jnp.sum(probs, axis=-1) - 1.0) < 1e-4))
    assert bool(jnp.all(jnp.abs(probs - ref) < 1e-4))

    print("KERNEL_OK")
</pallas_src>

<mosaic_0001>
module attributes {stable_mosaic.version = 11 : i64} {
  func.func @policy_net_kernel(%arg0: i32, %arg1: memref<8x4xf32, #tpu.memory_space<vmem>>, %arg2: memref<6x128xf32, #tpu.memory_space<vmem>>, %arg3: memref<1xf32, #tpu.memory_space<smem>>, %arg4: memref<8x2xf32, #tpu.memory_space<vmem>>) attributes {dimension_semantics = [#tpu.dimension_semantics<parallel>], iteration_bounds = array<i64: 1>, scalar_prefetch = 0 : i64, scratch_operands = 0 : i64, tpu.core_type = #tpu.core_type<tc>, window_params = [{transform_indices = @transform_0, window_bounds = array<i64: 8, 4>}, {pipeline_mode = #tpu.pipeline_mode<synchronous>, transform_indices = @transform_1, window_bounds = array<i64: 6, 128>}, {transform_indices = @transform_2, window_bounds = array<i64: 1>}, {transform_indices = @transform_3, window_bounds = array<i64: 8, 2>}]} {
    %c0 = arith.constant 0 : index
    %c0_0 = arith.constant 0 : index
    %0 = vector.load %arg1[%c0, %c0_0] : memref<8x4xf32, #tpu.memory_space<vmem>>, vector<8x4xf32>
    %c4 = arith.constant 4 : index
    %c0_1 = arith.constant 0 : index
    %1 = vector.load %arg2[%c4, %c0_1] : memref<6x128xf32, #tpu.memory_space<vmem>>, vector<1x128xf32>
    %2 = vector.shape_cast %1 : vector<1x128xf32> to vector<1x128xf32>
    %3 = vector.broadcast %2 : vector<1x128xf32> to vector<8x128xf32>
    %4 = vector.extract_strided_slice %0 {offsets = [0, 0], sizes = [8, 1], strides = [1, 1]} : vector<8x4xf32> to vector<8x1xf32>
    %c0_2 = arith.constant 0 : index
    %c0_3 = arith.constant 0 : index
    %5 = vector.load %arg2[%c0_2, %c0_3] : memref<6x128xf32, #tpu.memory_space<vmem>>, vector<1x128xf32>
    %6 = vector.broadcast %4 : vector<8x1xf32> to vector<8x128xf32>
    %7 = vector.broadcast %5 : vector<1x128xf32> to vector<8x128xf32>
    %8 = arith.mulf %6, %7 : vector<8x128xf32>
    %9 = arith.addf %3, %8 : vector<8x128xf32>
    %10 = vector.extract_strided_slice %0 {offsets = [0, 1], sizes = [8, 1], strides = [1, 1]} : vector<8x4xf32> to vector<8x1xf32>
    %c1 = arith.constant 1 : index
    %c0_4 = arith.constant 0 : index
    %11 = vector.load %arg2[%c1, %c0_4] : memref<6x128xf32, #tpu.memory_space<vmem>>, vector<1x128xf32>
    %12 = vector.broadcast %10 : vector<8x1xf32> to vector<8x128xf32>
    %13 = vector.broadcast %11 : vector<1x128xf32> to vector<8x128xf32>
    %14 = arith.mulf %12, %13 : vector<8x128xf32>
    %15 = arith.addf %9, %14 : vector<8x128xf32>
    %16 = vector.extract_strided_slice %0 {offsets = [0, 2], sizes = [8, 1], strides = [1, 1]} : vector<8x4xf32> to vector<8x1xf32>
    %c2 = arith.constant 2 : index
    %c0_5 = arith.constant 0 : index
    %17 = vector.load %arg2[%c2, %c0_5] : memref<6x128xf32, #tpu.memory_space<vmem>>, vector<1x128xf32>
    %18 = vector.broadcast %16 : vector<8x1xf32> to vector<8x128xf32>
    %19 = vector.broadcast %17 : vector<1x128xf32> to vector<8x128xf32>
    %20 = arith.mulf %18, %19 : vector<8x128xf32>
    %21 = arith.addf %15, %20 : vector<8x128xf32>
    %22 = vector.extract_strided_slice %0 {offsets = [0, 3], sizes = [8, 1], strides = [1, 1]} : vector<8x4xf32> to vector<8x1xf32>
    %c3 = arith.constant 3 : index
    %c0_6 = arith.constant 0 : index
    %23 = vector.load %arg2[%c3, %c0_6] : memref<6x128xf32, #tpu.memory_space<vmem>>, vector<1x128xf32>
    %24 = vector.broadcast %22 : vector<8x1xf32> to vector<8x128xf32>
    %25 = vector.broadcast %23 : vector<1x128xf32> to vector<8x128xf32>
    %26 = arith.mulf %24, %25 : vector<8x128xf32>
    %27 = arith.addf %21, %26 : vector<8x128xf32>
    %cst = arith.constant 0.000000e+00 : f32
    %28 = vector.broadcast %cst : f32 to vector<8x128xf32>
    %29 = arith.maximumf %27, %28 : vector<8x128xf32>
    %c5 = arith.constant 5 : index
    %c0_7 = arith.constant 0 : index
    %30 = vector.load %arg2[%c5, %c0_7] : memref<6x128xf32, #tpu.memory_space<vmem>>, vector<1x128xf32>
    %31 = vector.broadcast %30 : vector<1x128xf32> to vector<8x128xf32>
    %32 = arith.mulf %29, %31 : vector<8x128xf32>
    %cst_8 = arith.constant dense<0.000000e+00> : vector<8xf32>
    %33 = vector.multi_reduction <add>, %32, %cst_8 [1] : vector<8x128xf32> to vector<8xf32>
    %34 = vector.shape_cast %33 : vector<8xf32> to vector<8x1xf32>
    %c0_9 = arith.constant 0 : index
    %35 = memref.load %arg3[%c0_9] : memref<1xf32, #tpu.memory_space<smem>>
    %36 = vector.broadcast %35 : f32 to vector<8x1xf32>
    %37 = arith.addf %34, %36 : vector<8x1xf32>
    %38 = arith.negf %37 : vector<8x1xf32>
    %39 = math.exp %38 : vector<8x1xf32>
    %cst_10 = arith.constant 1.000000e+00 : f32
    %40 = vector.broadcast %cst_10 : f32 to vector<8x1xf32>
    %41 = arith.addf %40, %39 : vector<8x1xf32>
    %42 = arith.divf %40, %41 : vector<8x1xf32>
    %cst_11 = arith.constant 1.000000e+00 : f32
    %43 = vector.broadcast %cst_11 : f32 to vector<8x1xf32>
    %44 = arith.subf %43, %42 : vector<8x1xf32>
    %45 = tpu.concatenate %42, %44 in 1 : vector<8x1xf32>, vector<8x1xf32> -> vector<8x2xf32>
    %c0_12 = arith.constant 0 : index
    %c0_13 = arith.constant 0 : index
    %46 = vector.load %arg4[%c0_12, %c0_13] : memref<8x2xf32, #tpu.memory_space<vmem>>, vector<8x2xf32>
    tpu.vector_store %arg4[%c0_12, %c0_13], %45 {strides = array<i32>} : memref<8x2xf32, #tpu.memory_space<vmem>>, vector<8x2xf32>,
    return
  }
  func.func @transform_0(%arg0: i32) -> (i32, i32) {
    %c0_i32 = arith.constant 0 : i32
    %c0_i32_0 = arith.constant 0 : i32
    return %arg0, %c0_i32 : i32, i32
  }
  func.func @transform_1(%arg0: i32) -> (i32, i32) {
    %c0_i32 = arith.constant 0 : i32
    %c0_i32_0 = arith.constant 0 : i32
    %c0_i32_1 = arith.constant 0 : i32
    return %c0_i32, %c0_i32_0 : i32, i32
  }
  func.func @transform_2(%arg0: i32) -> i32 {
    %c0_i32 = arith.constant 0 : i32
    %c0_i32_0 = arith.constant 0 : i32
    return %c0_i32 : i32
  }
  func.func @transform_3(%arg0: i32) -> (i32, i32) {
    %c0_i32 = arith.constant 0 : i32
    %c0_i32_0 = arith.constant 0 : i32
    return %arg0, %c0_i32 : i32, i32
  }
}

</mosaic_0001>

<bundles_post_ra>
// kernel: tpu_custom_call.1
= control target key start
LH: loop header
LB: loop body
LE: loop exit
PB: predicated region body
PF: predicated region fallthrough
CT: control target
= control target key end

     0   :  { %v113_v0 = vmov 0   ;;  %v114_v2 = vmov 2   ;;  %v115_v3 = vmov 1   ;;  %v116_v4 = vmov 3   ;;  %s164_s0 = inlined_call_operand.vmem [shape: f32[8,4], index: 0, kind: input, shape index: {}]   ;;  %s165_s1 = inlined_call_operand.vmem [shape: f32[6,128], index: 1, kind: input, shape index: {}]   ;;  %s166_s2 = inlined_call_operand.<no memory space> [shape: f32[1], index: 2, kind: input, shape index: {}]   ;;  %s167_s3 = inlined_call_operand.vmem [shape: f32[8,2], index: 3, kind: output, shape index: {}]  }
   0x1   :  { %104 = vset.pattern.permute.xlu0 %v113_v0  ;;  %v15_v1 = vld [vmem:[%s164_s0] sm:$0xff]  ;;  %106 = vset.pattern.permute.xlu1 %v114_v2  ;;  %v76_v25 = vstv %s166_s2  ;;  %vm85_vm0 = vcmask 7168   ;;  %vm87_vm1 = vcmask 15360  }
   0x2   :  { %24 = vperm.xlu0 %104, %v15_v1   ;;  %46 = vperm.xlu1 %106, %v15_v1   ;;  %v94_v5 = vld [vmem:[%s165_s1] ss:$0 sm:$0xff]  ;;  %v93_v9 = vld [vmem:[%s165_s1 + $0x4] ss:$0 sm:$0xff]  ;;  %v95_v10 = vld [vmem:[%s165_s1 + $0x1] ss:$0 sm:$0xff] }
   0x3   :  { %v96_v11 = vld [vmem:[%s165_s1 + $0x2] ss:$0 sm:$0xff]  ;;  %v97_v13 = vld [vmem:[%s165_s1 + $0x3] ss:$0 sm:$0xff]  ;;  %v98_v22 = vld [vmem:[%s165_s1 + $0x5] ss:$0 sm:$0xff] }
   0x6   :  { %105 = vset.pattern.permute.xlu0 %v115_v3  ;;  %107 = vset.pattern.permute.xlu1 %v116_v4 }
   0x7   :  { %35 = vperm.xlu0 %105, %v15_v1   ;;  %57 = vperm.xlu1 %107, %v15_v1  }
   0xb   :  { %108 = vset.pattern.permute.xlu0 %v116_v4 }
  0x81   :  { %v25_v6 = vpop.permute.xlu0 %24  ;;  %v47_v7 = vpop.permute.xlu1 %46 }
  0x82   :  { %v31_v8 = vmul.f32 %v94_v5, %v25_v6  ;;  %v53_v17 = vmul.f32 %v96_v11, %v47_v7 }
  0x84   :  { %v32_v15 = vadd.f32 %v93_v9, %v31_v8 }
  0x86   :  { %v36_v12 = vpop.permute.xlu0 %35  ;;  %v58_v14 = vpop.permute.xlu1 %57 }
  0x87   :  { %v42_v16 = vmul.f32 %v95_v10, %v36_v12  ;;  %v64_v19 = vmul.f32 %v97_v13, %v58_v14 }
  0x89   :  { %v43_v18 = vadd.f32 %v42_v16, %v32_v15 }
  0x8b   :  { %v54_v20 = vadd.f32 %v53_v17, %v43_v18 }
  0x8d   :  { %v65_v21 = vadd.f32 %v64_v19, %v54_v20 }
  0x8f   :  { %v66_v23 = vmax.f32 %v65_v21, 0.0 }
  0x91   :  { %v72_v24 = vmul.f32 %v98_v22, %v66_v23 }
  0x93   :  { %73 = vadd.xlane.f32.xlu1 %v72_v24 }
 0x120   :  { %v74_v26 = vpop.xlane.xlu1 %73 }
 0x121   :  { %v77_v27 = vadd.f32 %v76_v25, %v74_v26 }
 0x123   :  { %v99_v28 = vmul.f32 -1.442695, %v77_v27 }
 0x125   :  { %109 = vpow2.f32 %v99_v28 }
 0x12f   :  { %v110_v29 = vpop.eup %109 }
 0x130   :  { %v81_v30 = vadd.f32 1.0, %v110_v29 }
 0x132   :  { %111 = vrcp.f32 %v81_v30 }
 0x13c   :  { %v112_v31 = vpop.eup %111 }
 0x13d   :  { %v84_v32 = vsub.f32 1.0, %v112_v31 }
 0x13f   :  { %v86_v33 = vsel %vm85_vm0, %v112_v31, %v84_v32 }
 0x140   :  { %88 = vst.msk [vmem:[%s167_s3] sm:$0xff] %vm87_vm1, %v86_v33 }

</bundles_post_ra>
